<compile_context>
chip_gen: v5e
topology: v5e:2x2
jax: 0.10.0
libtpu: 0.0.40
codegen_flags: <defaults>
</compile_context>

<pallas_src>
import math

import jax
import jax.numpy as jnp
from jax.experimental import pallas as pl
from jax.experimental.pallas import tpu as pltpu


def _round_up(x, m):
    return ((x + m - 1) // m) * m


def _cdiv(a, b):
    return -(-a // b)


def _semantic_aug_kernel(n1_ref, n2_ref, c1_ref, c2_ref, o1_ref, o2_ref):
    # n*_ref : (tile_rows, lanes) noise tiles (any float dtype)
    # c*_ref : (1, lanes) tiled per-feature scales (broadcast over rows)
    # o*_ref : (tile_rows, lanes) float32 (matches `.float()` in the module)
    o1_ref[...] = n1_ref[...].astype(jnp.float32) * c1_ref[...].astype(jnp.float32)
    o2_ref[...] = n2_ref[...].astype(jnp.float32) * c2_ref[...].astype(jnp.float32)


def _lane_packing(D, target_lanes=512):
    """Pick k = rows folded per repacked row so lanes = k*D is a multiple of 128.

    Avoids zero-padding the feature axis (which would inflate HBM traffic by
    ~128/D for small D); instead batch rows are folded into lane-dense rows
    and the scale vector is tiled k times (a row-major reshape, i.e. free).
    """
    if D % 128 == 0:
        return 1, D                                  # already lane-dense
    k = 128 // math.gcd(D, 128)                      # minimal fold: k*D % 128 == 0
    lanes = k * D
    widen = max(1, target_lanes // lanes)            # widen toward wider unmasked vst
    return k * widen, lanes * widen


def semantic_aug_forward(n1, n2, c1, c2, *, max_tile_elems=512 * 1024):
    """Pallas implementation of SemanticAug.forward.

    n1, n2 : (B, cond_dim) noise tensors (f32 or bf16).
    c1, c2 : (cond_dim,) per-feature scale vectors (the module's C1, C2).
    Returns (aug, aug2) as float32, each (B, cond_dim).
    """
    B, D = n1.shape
    assert n2.shape == (B, D)
    assert c1.shape == (D,) and c2.shape == (D,)

    # ---- Lane-dense repack (no feature-axis zero padding). -----------------
    k, lanes = _lane_packing(D)
    rows = max(_cdiv(B, k), 1)
    rows8 = _round_up(rows, 8)

    # ---- Batch tiling: big tiles (amortize per-step overhead), capped so
    #      2 in + 2 out double-buffered tiles fit scoped VMEM; >=2 tiles on
    #      non-tiny batches so v7x's two TensorCores both get work. ----------
    tile_cap = max(8, (max_tile_elems // lanes) // 8 * 8)
    num_tiles = _cdiv(rows8, tile_cap)
    if rows8 >= 16:
        num_tiles = max(num_tiles, 2)
    tile_rows = _round_up(_cdiv(rows8, num_tiles), 8)
    rows_pad = tile_rows * num_tiles
    B_pad = rows_pad * k

    def repack(x):
        if B_pad != B:                               # only copy when unaligned
            x = jnp.pad(x, ((0, B_pad - B), (0, 0)))
        return x.reshape(rows_pad, lanes)            # row-major reshape: free

    n1p = repack(n1)
    n2p = repack(n2)
    c1p = jnp.tile(c1.astype(jnp.float32), k).reshape(1, lanes)
    c2p = jnp.tile(c2.astype(jnp.float32), k).reshape(1, lanes)

    in_bytes = jnp.dtype(n1.dtype).itemsize
    cost = pl.CostEstimate(
        flops=2 * rows_pad * lanes,
        transcendentals=0,
        bytes_accessed=2 * rows_pad * lanes * (in_bytes + 4) + 2 * lanes * 4,
    )

    row_spec = pl.BlockSpec((tile_rows, lanes), lambda i: (i, 0))
    scale_spec = pl.BlockSpec((1, lanes), lambda i: (0, 0))

    o1, o2 = pl.pallas_call(
        _semantic_aug_kernel,
        out_shape=(
            jax.ShapeDtypeStruct((rows_pad, lanes), jnp.float32),
            jax.ShapeDtypeStruct((rows_pad, lanes), jnp.float32),
        ),
        grid=(num_tiles,),
        in_specs=[row_spec, row_spec, scale_spec, scale_spec],
        out_specs=(row_spec, row_spec),
        compiler_params=pltpu.CompilerParams(
            dimension_semantics=("parallel",),
            vmem_limit_bytes=32 * 1024 * 1024,
        ),
        cost_estimate=cost,
    )(n1p, n2p, c1p, c2p)

    def unpack(o):
        o = o.reshape(B_pad, D)
        return o if B_pad == B else o[:B]

    return unpack(o1), unpack(o2)


def make_semantic_aug_params(cond_dim, p1=1.0, p2=1.0, seed=0):
    """Deterministically synthesize the statistics the module loads from disk
    and reproduce the C1 / C2 derivation from SemanticAug.__init__."""
    key = jax.random.PRNGKey(seed)
    k1, k2, k3 = jax.random.split(key, 3)

    # Synthetic stand-ins for the three (cond_dim, cond_dim) .npy matrices.
    c_text_true_given_image_true = jax.random.uniform(
        k1, (cond_dim, cond_dim), jnp.float32, 0.1, 1.0)
    c_image_true_given_text_true = jax.random.uniform(
        k2, (cond_dim, cond_dim), jnp.float32, 0.1, 1.0)
    c_image_true_image_true = c_image_true_given_text_true + jax.random.uniform(
        k3, (cond_dim, cond_dim), jnp.float32, 0.0, 1.0)

    # C1 = diag(c_text_true_given_image_true * p1)
    C1 = jnp.diagonal(c_text_true_given_image_true * p1)

    # E  = 1 - diag(c_ii - c_i|t) / diag(c_ii)
    d_ii = jnp.diagonal(c_image_true_image_true)
    d_it = jnp.diagonal(c_image_true_given_text_true)
    E = 1.0 - (d_ii - d_it) / d_ii

    # C2 = diag(c_ii) * E * p2
    C2 = d_ii * E * p2
    return C1, C2


if __name__ == "__main__":
    batch = 2
    cond_dim = 32
    p1, p2 = 1.0, 1.0

    C1, C2 = make_semantic_aug_params(cond_dim, p1=p1, p2=p2, seed=0)

    key = jax.random.PRNGKey(0)
    kn1, kn2, kb1, kb2 = jax.random.split(key, 4)
    n1 = jax.random.normal(kn1, (batch, cond_dim), jnp.float32)
    n2 = jax.random.normal(kn2, (batch, cond_dim), jnp.float32)

    aug, aug2 = semantic_aug_forward(n1, n2, C1, C2)
    jax.block_until_ready((aug, aug2))

    # Cross-check against a plain-JAX reference of the PyTorch forward.
    ref_aug = (n1 * C1[None, :]).astype(jnp.float32)
    ref_aug2 = (n2 * C2[None, :]).astype(jnp.float32)
    assert aug.shape == (batch, cond_dim) and aug.dtype == jnp.float32
    assert aug2.shape == (batch, cond_dim) and aug2.dtype == jnp.float32
    assert jnp.allclose(aug, ref_aug, atol=1e-6)
    assert jnp.allclose(aug2, ref_aug2, atol=1e-6)

    # Training-scale batch exercises the multi-tile (grid >= 2) path.
    big_b = 1000
    b1 = jax.random.normal(kb1, (big_b, cond_dim), jnp.float32)
    b2 = jax.random.normal(kb2, (big_b, cond_dim), jnp.float32)
    ba, ba2 = semantic_aug_forward(b1, b2, C1, C2)
    jax.block_until_ready((ba, ba2))
    assert jnp.allclose(ba, b1 * C1[None, :], atol=1e-6)
    assert jnp.allclose(ba2, b2 * C2[None, :], atol=1e-6)

    # bf16 noise path: halves read-side HBM traffic; output stays float32.
    h1 = n1.astype(jnp.bfloat16)
    h2 = n2.astype(jnp.bfloat16)
    ha, ha2 = semantic_aug_forward(h1, h2, C1, C2)
    jax.block_until_ready((ha, ha2))
    assert ha.dtype == jnp.float32 and ha2.dtype == jnp.float32
    assert jnp.allclose(ha, h1.astype(jnp.float32) * C1[None, :], atol=1e-6)
    assert jnp.allclose(ha2, h2.astype(jnp.float32) * C2[None, :], atol=1e-6)

    print("KERNEL_OK")
</pallas_src>

<mosaic_0001>
module attributes {stable_mosaic.version = 11 : i64} {
  func.func @_semantic_aug_kernel(%arg0: i32, %arg1: memref<8x512xf32, #tpu.memory_space<vmem>>, %arg2: memref<8x512xf32, #tpu.memory_space<vmem>>, %arg3: memref<1x512xf32, #tpu.memory_space<vmem>>, %arg4: memref<1x512xf32, #tpu.memory_space<vmem>>, %arg5: memref<8x512xf32, #tpu.memory_space<vmem>>, %arg6: memref<8x512xf32, #tpu.memory_space<vmem>>) attributes {dimension_semantics = [#tpu.dimension_semantics<parallel>], iteration_bounds = array<i64: 1>, scalar_prefetch = 0 : i64, scratch_operands = 0 : i64, tpu.core_type = #tpu.core_type<tc>, window_params = [{transform_indices = @transform_0, window_bounds = array<i64: 8, 512>}, {transform_indices = @transform_1, window_bounds = array<i64: 8, 512>}, {pipeline_mode = #tpu.pipeline_mode<synchronous>, transform_indices = @transform_2, window_bounds = array<i64: 1, 512>}, {pipeline_mode = #tpu.pipeline_mode<synchronous>, transform_indices = @transform_3, window_bounds = array<i64: 1, 512>}, {transform_indices = @transform_4, window_bounds = array<i64: 8, 512>}, {transform_indices = @transform_5, window_bounds = array<i64: 8, 512>}]} {
    %c0 = arith.constant 0 : index
    %c0_0 = arith.constant 0 : index
    %0 = vector.load %arg1[%c0, %c0_0] : memref<8x512xf32, #tpu.memory_space<vmem>>, vector<8x512xf32>
    %c0_1 = arith.constant 0 : index
    %c0_2 = arith.constant 0 : index
    %1 = vector.load %arg3[%c0_1, %c0_2] : memref<1x512xf32, #tpu.memory_space<vmem>>, vector<1x512xf32>
    %2 = vector.broadcast %1 : vector<1x512xf32> to vector<8x512xf32>
    %3 = arith.mulf %0, %2 : vector<8x512xf32>
    %c0_3 = arith.constant 0 : index
    %c0_4 = arith.constant 0 : index
    %4 = vector.load %arg5[%c0_3, %c0_4] : memref<8x512xf32, #tpu.memory_space<vmem>>, vector<8x512xf32>
    tpu.vector_store %arg5[%c0_3, %c0_4], %3 {strides = array<i32>} : memref<8x512xf32, #tpu.memory_space<vmem>>, vector<8x512xf32>,
    %c0_5 = arith.constant 0 : index
    %c0_6 = arith.constant 0 : index
    %5 = vector.load %arg2[%c0_5, %c0_6] : memref<8x512xf32, #tpu.memory_space<vmem>>, vector<8x512xf32>
    %c0_7 = arith.constant 0 : index
    %c0_8 = arith.constant 0 : index
    %6 = vector.load %arg4[%c0_7, %c0_8] : memref<1x512xf32, #tpu.memory_space<vmem>>, vector<1x512xf32>
    %7 = vector.broadcast %6 : vector<1x512xf32> to vector<8x512xf32>
    %8 = arith.mulf %5, %7 : vector<8x512xf32>
    %c0_9 = arith.constant 0 : index
    %c0_10 = arith.constant 0 : index
    %9 = vector.load %arg6[%c0_9, %c0_10] : memref<8x512xf32, #tpu.memory_space<vmem>>, vector<8x512xf32>
    tpu.vector_store %arg6[%c0_9, %c0_10], %8 {strides = array<i32>} : memref<8x512xf32, #tpu.memory_space<vmem>>, vector<8x512xf32>,
    return
  }
  func.func @transform_0(%arg0: i32) -> (i32, i32) {
    %c0_i32 = arith.constant 0 : i32
    %c0_i32_0 = arith.constant 0 : i32
    return %arg0, %c0_i32 : i32, i32
  }
  func.func @transform_1(%arg0: i32) -> (i32, i32) {
    %c0_i32 = arith.constant 0 : i32
    %c0_i32_0 = arith.constant 0 : i32
    return %arg0, %c0_i32 : i32, i32
  }
  func.func @transform_2(%arg0: i32) -> (i32, i32) {
    %c0_i32 = arith.constant 0 : i32
    %c0_i32_0 = arith.constant 0 : i32
    %c0_i32_1 = arith.constant 0 : i32
    return %c0_i32, %c0_i32_0 : i32, i32
  }
  func.func @transform_3(%arg0: i32) -> (i32, i32) {
    %c0_i32 = arith.constant 0 : i32
    %c0_i32_0 = arith.constant 0 : i32
    %c0_i32_1 = arith.constant 0 : i32
    return %c0_i32, %c0_i32_0 : i32, i32
  }
  func.func @transform_4(%arg0: i32) -> (i32, i32) {
    %c0_i32 = arith.constant 0 : i32
    %c0_i32_0 = arith.constant 0 : i32
    return %arg0, %c0_i32 : i32, i32
  }
  func.func @transform_5(%arg0: i32) -> (i32, i32) {
    %c0_i32 = arith.constant 0 : i32
    %c0_i32_0 = arith.constant 0 : i32
    return %arg0, %c0_i32 : i32, i32
  }
}

</mosaic_0001>

<bundles_post_ra>
// kernel: tpu_custom_call.1
= control target key start
LH: loop header
LB: loop body
LE: loop exit
PB: predicated region body
PF: predicated region fallthrough
CT: control target
= control target key end

     0   :  { %11 = vsyncpa [#allocation3], 0  ;;  %s369_s0 = inlined_call_operand.hbm [shape: f32[8,512], index: 0, kind: input, shape index: {}]   ;;  %s370_s1 = inlined_call_operand.hbm [shape: f32[8,512], index: 1, kind: input, shape index: {}]   ;;  %s371_s2 = inlined_call_operand.hbm [shape: f32[1,512], index: 2, kind: input, shape index: {}]   ;;  %s372_s3 = inlined_call_operand.hbm [shape: f32[1,512], index: 3, kind: input, shape index: {}]   ;;  %s373_s4 = inlined_call_operand.hbm [shape: f32[8,512], index: 4, kind: output, shape index: {0}]   ;;  %s374_s5 = inlined_call_operand.hbm [shape: f32[8,512], index: 5, kind: output, shape index: {1}]  }
   0x1   :  { %12 = vsyncpa [#allocation6], 0 }
   0x2   :  { %13 = vsyncpa [#allocation9], 0 }
   0x3   :  { %14 = vsyncpa [#allocation4], 0  ;;  %s32_s20 = sshll.u32 %s370_s1, 4  ;;  %s33_s20 = int_to_ptr.hbm [resolvable:$true] %s32_s20 }
   0x4   :  { %15 = vsyncpa [#allocation12], 0  ;;  %s315_s21 = smov [#allocation5]   ;;  %s21_s25 = sshll.u32 %s369_s0, 4  ;;  %s22_s25 = int_to_ptr.hbm [resolvable:$true] %s21_s25 }
   0x5   :  { %s34_s22 = sshll.u32 %s315_s21, 4  ;;  %s316_s26 = smov [#allocation2]   ;;  %s35_s22 = int_to_ptr.vmem [resolvable:$true] %s34_s22 }
   0x6   :  { %37 = dma.hbm_to_vmem [thread:$0]  %s33_s20, 512, %s35_s22, [#allocation6]  }
   0x7   :  { %s23_s27 = sshll.u32 %s316_s26, 4  ;;  %s43_s30 = sshll.u32 %s371_s2, 4  ;;  %s24_s27 = int_to_ptr.vmem [resolvable:$true] %s23_s27  ;;  %s44_s30 = int_to_ptr.hbm [resolvable:$true] %s43_s30 }
   0x8   :  { %26 = dma.hbm_to_vmem [thread:$0]  %s22_s25, 512, %s24_s27, [#allocation3]  }
   0x9   :  { %s54_s7 = sshll.u32 %s372_s3, 4  ;;  %s317_s8 = smov [#allocation7]   ;;  %s55_s7 = int_to_ptr.hbm [resolvable:$true] %s54_s7 }
   0xa   :  { %s45_s9 = sshll.u32 %s317_s8, 4  ;;  %s318_s0 = smov [#allocation8]   ;;  %s46_s9 = int_to_ptr.vmem [resolvable:$true] %s45_s9 }
   0xb   :  { %48 = dma.hbm_to_vmem [thread:$0]  %s44_s30, 64, %s46_s9, [#allocation6]  }
   0xc   :  { %s56_s10 = sshll.u32 %s318_s0, 4  ;;  %s57_s10 = int_to_ptr.vmem [resolvable:$true] %s56_s10 }
   0xd   :  { %59 = dma.hbm_to_vmem [thread:$0]  %s55_s7, 64, %s57_s10, [#allocation9]  }
   0xe   :  { %305 = dma.done.wait [#allocation3], 512  }
   0xf   :  { %306 = vsyncadd [#allocation3], 4294966784 }
  0x10   :  { %307 = dma.done.wait [#allocation6], 576  }
  0x11   :  { %308 = vsyncadd [#allocation6], 4294966720 }
  0x12   :  { %309 = dma.done.wait [#allocation9], 64  }
  0x13   :  { %310 = vsyncadd [#allocation9], 4294967232  ;;  %v76_v0 = vld [vmem:[#allocation2] sm:$0xff]  ;;  %v77_v2 = vld [vmem:[#allocation2 + $0x8] sm:$0xff]  ;;  %s319_s2 = smov [#allocation10]   ;;  %s127_s13 = sshll.u32 %s373_s4, 4  ;;  %s128_s13 = int_to_ptr.hbm [resolvable:$true] %s127_s13 }
  0x14   :  { %v80_v1 = vld [vmem:[#allocation7] sm:$0xf]  ;;  %v78_v5 = vld [vmem:[#allocation2 + $0x10] sm:$0xff]  ;;  %v79_v7 = vld [vmem:[#allocation2 + $0x18] sm:$0xff]  ;;  %s125_s3 = sshll.u32 %s319_s2, 4  ;;  %s320_s14 = smov [#allocation11]   ;;  %s126_s3 = int_to_ptr.vmem [resolvable:$true] %s125_s3 }
  0x15   :  { %v82_v3 = vperm.slane %v80_v1, 0  ;;  %v83_v4 = vperm.slane %v80_v1, 1  ;;  %v84_v6 = vperm.slane %v80_v1, 2  ;;  %v85_v8 = vperm.slane %v80_v1, 3  ;;  %v102_v9 = vld [vmem:[#allocation8] sm:$0xf] }
  0x16   :  { %v98_v14 = vld [vmem:[#allocation5] sm:$0xff]  ;;  %v99_v15 = vld [vmem:[#allocation5 + $0x8] sm:$0xff]  ;;  %v104_v16 = vperm.slane %v102_v9, 0  ;;  %v105_v17 = vperm.slane %v102_v9, 1  ;;  %v100_v18 = vld [vmem:[#allocation5 + $0x10] sm:$0xff]  ;;  %v106_v19 = vperm.slane %v102_v9, 2 }
  0x17   :  { %v90_v10 = vmul.f32 %v82_v3, %v76_v0  ;;  %v91_v11 = vmul.f32 %v83_v4, %v77_v2  ;;  %v92_v12 = vmul.f32 %v84_v6, %v78_v5  ;;  %v93_v13 = vmul.f32 %v85_v8, %v79_v7  ;;  %v101_v21 = vld [vmem:[#allocation5 + $0x18] sm:$0xff]  ;;  %s136_s15 = sshll.u32 %s320_s14, 4  ;;  %s138_s4 = sshll.u32 %s374_s5, 4  ;;  %s137_s15 = int_to_ptr.vmem [resolvable:$true] %s136_s15  ;;  %s139_s4 = int_to_ptr.hbm [resolvable:$true] %s138_s4 }
  0x18   :  { %v107_v20 = vperm.slane %v102_v9, 3  ;;  %v112_v22 = vmul.f32 %v104_v16, %v98_v14  ;;  %v113_v23 = vmul.f32 %v105_v17, %v99_v15  ;;  %v114_v24 = vmul.f32 %v106_v19, %v100_v18 }
  0x19   :  { %94 = vst [vmem:[#allocation10] sm:$0xff] %v90_v10 }
  0x1a   :  { %95 = vst [vmem:[#allocation10 + $0x8] sm:$0xff] %v91_v11  ;;  %v115_v25 = vmul.f32 %v107_v20, %v101_v21 }
  0x1b   :  { %96 = vst [vmem:[#allocation10 + $0x10] sm:$0xff] %v92_v12 }
  0x1c   :  { %97 = vst [vmem:[#allocation10 + $0x18] sm:$0xff] %v93_v13 }
  0x1d   :  { %116 = vst [vmem:[#allocation11] sm:$0xff] %v112_v22  ;;  %130 = dma.vmem_to_hbm [thread:$0]  %s126_s3, 512, %s128_s13, [#allocation4]  }
  0x1e   :  { %117 = vst [vmem:[#allocation11 + $0x8] sm:$0xff] %v113_v23 }
  0x1f   :  { %118 = vst [vmem:[#allocation11 + $0x10] sm:$0xff] %v114_v24 }
  0x20   :  { %119 = vst [vmem:[#allocation11 + $0x18] sm:$0xff] %v115_v25 }
  0x21   :  { %141 = dma.vmem_to_hbm [thread:$0]  %s137_s15, 512, %s139_s4, [#allocation12]  }
  0x22   :  { %311 = dma.done.wait [#allocation4], 512  }
  0x23   :  { %312 = vsyncadd [#allocation4], 4294966784 }
  0x24   :  { %313 = dma.done.wait [#allocation12], 512  }
  0x25   :  { %314 = vsyncadd [#allocation12], 4294966784 }
  0x26   :  { %150 = vsyncpa [#allocation3], 1 }
  0x27   :  { %151 = vsyncpa [#allocation6], 1 }
  0x28   :  { %152 = vsyncpa [#allocation9], 1 }
  0x29   :  { %153 = vsyncpa [#allocation4], 1 }
  0x2a   :  { %154 = vsyncpa [#allocation12], 1 }

</bundles_post_ra>
